<compile_context>
chip_gen: v5e
topology: v5e:2x2
jax: 0.10.0
libtpu: 0.0.40
codegen_flags: <defaults>
</compile_context>

<pallas_src>
import functools

import jax
import jax.numpy as jnp
from jax import lax
from jax.experimental import pallas as pl
from jax.experimental.pallas import tpu as pltpu


def _round_up(x, m):
    return ((x + m - 1) // m) * m


def _self_gated_kernel(x_ref, w_ref, b_ref, o_ref, *, mxu_dtype):
    # x_ref: (TM, Hp) streamed input tile.
    # w_ref: (Hp, Hp) weight in PyTorch (out, in) layout, VMEM-resident.
    # b_ref: (1, Hp) f32 bias, VMEM-resident.
    x = x_ref[...]
    # MXU: contract x dim 1 with weight dim 1 (== x @ W^T), f32 accumulation.
    logits = lax.dot_general(
        x.astype(mxu_dtype),
        w_ref[...],
        dimension_numbers=(((1,), (1,)), ((), ())),
        preferred_element_type=jnp.float32,
    )
    # Epilogue in f32: bias add (VPU), sigmoid (EUP), gate multiply (VPU).
    gate = jax.nn.sigmoid(logits + b_ref[...])
    o_ref[...] = (x.astype(jnp.float32) * gate).astype(o_ref.dtype)


def self_gated(x, weight, bias, *, mxu_dtype=jnp.bfloat16,
               vmem_budget_bytes=48 * 1024 * 1024):
    """y = x * sigmoid(x @ weight.T + bias).

    x: (..., H); weight: (H, H) in PyTorch Linear (out, in) layout; bias: (H,).
    """
    orig_shape = x.shape
    H = orig_shape[-1]
    x2d = x.reshape(-1, H)
    M = x2d.shape[0]

    # Lane-dense layout: pad H (lane dim) to a multiple of 128.
    Hp = _round_up(H, 128)

    x_bytes = jnp.dtype(x.dtype).itemsize
    o_bytes = x_bytes
    w_dtype = jnp.dtype(mxu_dtype)
    w_bytes = Hp * Hp * w_dtype.itemsize

    # Pick the largest MXU-friendly row tile such that the resident weight plus
    # double-buffered x/out tiles fit the (v7x-safe) VMEM budget.
    per_row = 2 * Hp * (x_bytes + o_bytes)            # double-buffered in + out
    avail = max(vmem_budget_bytes - w_bytes - 4 * Hp, per_row * 8)
    tm = int(min(avail // per_row, 1024))
    if tm >= 128:
        tm = (tm // 128) * 128
    else:
        tm = max((tm // 8) * 8, 8)
    m_pad8 = _round_up(M, 8)
    if tm >= m_pad8:
        tm = m_pad8
    Mp = _round_up(m_pad8, tm)
    grid_m = Mp // tm

    # Zero-pad operands. Padded x columns are zero, so padded weight rows/cols
    # contribute nothing; padded outputs are sliced away below.
    if Mp == M and Hp == H:
        xp = x2d
        wp = weight.astype(w_dtype)
        bp = bias.astype(jnp.float32).reshape(1, Hp)
    else:
        xp = jnp.zeros((Mp, Hp), x.dtype).at[:M, :H].set(x2d)
        wp = jnp.zeros((Hp, Hp), w_dtype).at[:H, :H].set(weight.astype(w_dtype))
        bp = jnp.zeros((1, Hp), jnp.float32).at[0, :H].set(
            bias.astype(jnp.float32))

    # Resident weight + double-buffered x/out tiles + headroom; capped well
    # under physical VMEM on every generation.
    vmem_limit = int(min(
        w_bytes + 2 * tm * Hp * (x_bytes + o_bytes) + (8 << 20),
        100 * 1024 * 1024))

    cost = pl.CostEstimate(
        flops=2 * Mp * Hp * Hp,
        transcendentals=Mp * Hp,
        bytes_accessed=Mp * Hp * (x_bytes + o_bytes) + w_bytes + 4 * Hp,
    )

    kernel = functools.partial(_self_gated_kernel, mxu_dtype=mxu_dtype)

    out = pl.pallas_call(
        kernel,
        out_shape=jax.ShapeDtypeStruct((Mp, Hp), x.dtype),
        grid_spec=pltpu.PrefetchScalarGridSpec(
            num_scalar_prefetch=0,
            grid=(grid_m,),
            in_specs=[
                pl.BlockSpec((tm, Hp), lambda i: (i, 0)),   # streamed x tile
                pl.BlockSpec((Hp, Hp), lambda i: (0, 0)),   # resident weight
                pl.BlockSpec((1, Hp), lambda i: (0, 0)),    # resident bias
            ],
            out_specs=pl.BlockSpec((tm, Hp), lambda i: (i, 0)),
        ),
        compiler_params=pltpu.CompilerParams(
            dimension_semantics=("parallel",),  # v7x: shard rows over 2 TCs
            vmem_limit_bytes=vmem_limit,
        ),
        cost_estimate=cost,
    )(xp, wp, bp)

    return out[:M, :H].reshape(orig_shape)


def self_gated_ref(x, weight, bias):
    # Pure-JAX reference mirroring the PyTorch module exactly (f32 matmul).
    x_l = jnp.einsum("...i,oi->...o", x, weight) + bias
    return x * jax.nn.sigmoid(x_l)


if __name__ == "__main__":
    key = jax.random.PRNGKey(0)
    batch, seq, hidden = 2, 8, 32

    k_x, k_w, k_b = jax.random.split(key, 3)
    x = jax.random.normal(k_x, (batch, seq, hidden), dtype=jnp.float32)

    # Deterministic "PyTorch-default-like" init: U(-1/sqrt(H), 1/sqrt(H)).
    bound = 1.0 / (hidden ** 0.5)
    weight = jax.random.uniform(k_w, (hidden, hidden), jnp.float32, -bound, bound)
    bias = jax.random.uniform(k_b, (hidden,), jnp.float32, -bound, bound)

    ref = self_gated_ref(x, weight, bias)

    # Default fast path: bf16 MXU operands, f32 accumulation + f32 epilogue.
    out_bf16 = jax.block_until_ready(self_gated(x, weight, bias))
    assert out_bf16.shape == x.shape
    assert jnp.allclose(out_bf16, ref, atol=3e-2, rtol=3e-2), \
        "bf16-MXU path mismatch vs reference"

    # Exact f32 MXU path for tight-tolerance verification.
    out_f32 = jax.block_until_ready(
        self_gated(x, weight, bias, mxu_dtype=jnp.float32))
    assert out_f32.shape == x.shape
    assert jnp.allclose(out_f32, ref, atol=1e-5, rtol=1e-5), \
        "f32-MXU path mismatch vs reference"

    print("KERNEL_OK")
</pallas_src>

<mosaic_0001>
module attributes {stable_mosaic.version = 11 : i64} {
  func.func @_self_gated_kernel(%arg0: i32, %arg1: memref<16x128xf32, #tpu.memory_space<vmem>>, %arg2: memref<128x128xbf16, #tpu.memory_space<vmem>>, %arg3: memref<1x128xf32, #tpu.memory_space<vmem>>, %arg4: memref<16x128xf32, #tpu.memory_space<vmem>>) attributes {dimension_semantics = [#tpu.dimension_semantics<parallel>], iteration_bounds = array<i64: 1>, scalar_prefetch = 0 : i64, scratch_operands = 0 : i64, tpu.core_type = #tpu.core_type<tc>, window_params = [{transform_indices = @transform_0, window_bounds = array<i64: 16, 128>}, {pipeline_mode = #tpu.pipeline_mode<synchronous>, transform_indices = @transform_1, window_bounds = array<i64: 128, 128>}, {pipeline_mode = #tpu.pipeline_mode<synchronous>, transform_indices = @transform_2, window_bounds = array<i64: 1, 128>}, {transform_indices = @transform_3, window_bounds = array<i64: 16, 128>}]} {
    %c0 = arith.constant 0 : index
    %c0_0 = arith.constant 0 : index
    %0 = vector.load %arg1[%c0, %c0_0] : memref<16x128xf32, #tpu.memory_space<vmem>>, vector<16x128xf32>
    %1 = arith.truncf %0 : vector<16x128xf32> to vector<16x128xbf16>
    %c0_1 = arith.constant 0 : index
    %c0_2 = arith.constant 0 : index
    %2 = vector.load %arg2[%c0_1, %c0_2] : memref<128x128xbf16, #tpu.memory_space<vmem>>, vector<128x128xbf16>
    %cst = arith.constant dense<0.000000e+00> : vector<16x128xf32>
    %3 = tpu.matmul %1, %2, %cst {dimension_numbers = #tpu.dot_dimension_numbers<[1], [1], [0], [0], [0, 0, 1, 0], [], []>} : vector<16x128xbf16>, vector<128x128xbf16>, vector<16x128xf32> -> vector<16x128xf32>
    %c0_3 = arith.constant 0 : index
    %c0_4 = arith.constant 0 : index
    %4 = vector.load %arg3[%c0_3, %c0_4] : memref<1x128xf32, #tpu.memory_space<vmem>>, vector<1x128xf32>
    %5 = vector.broadcast %4 : vector<1x128xf32> to vector<16x128xf32>
    %6 = arith.addf %3, %5 : vector<16x128xf32>
    %7 = arith.negf %6 : vector<16x128xf32>
    %8 = math.exp %7 : vector<16x128xf32>
    %cst_5 = arith.constant 1.000000e+00 : f32
    %9 = vector.broadcast %cst_5 : f32 to vector<16x128xf32>
    %10 = arith.addf %9, %8 : vector<16x128xf32>
    %11 = arith.divf %9, %10 : vector<16x128xf32>
    %12 = arith.mulf %0, %11 : vector<16x128xf32>
    %c0_6 = arith.constant 0 : index
    %c0_7 = arith.constant 0 : index
    %13 = vector.load %arg4[%c0_6, %c0_7] : memref<16x128xf32, #tpu.memory_space<vmem>>, vector<16x128xf32>
    tpu.vector_store %arg4[%c0_6, %c0_7], %12 {strides = array<i32>} : memref<16x128xf32, #tpu.memory_space<vmem>>, vector<16x128xf32>,
    return
  }
  func.func @transform_0(%arg0: i32) -> (i32, i32) {
    %c0_i32 = arith.constant 0 : i32
    %c0_i32_0 = arith.constant 0 : i32
    return %arg0, %c0_i32 : i32, i32
  }
  func.func @transform_1(%arg0: i32) -> (i32, i32) {
    %c0_i32 = arith.constant 0 : i32
    %c0_i32_0 = arith.constant 0 : i32
    %c0_i32_1 = arith.constant 0 : i32
    return %c0_i32, %c0_i32_0 : i32, i32
  }
  func.func @transform_2(%arg0: i32) -> (i32, i32) {
    %c0_i32 = arith.constant 0 : i32
    %c0_i32_0 = arith.constant 0 : i32
    %c0_i32_1 = arith.constant 0 : i32
    return %c0_i32, %c0_i32_0 : i32, i32
  }
  func.func @transform_3(%arg0: i32) -> (i32, i32) {
    %c0_i32 = arith.constant 0 : i32
    %c0_i32_0 = arith.constant 0 : i32
    return %arg0, %c0_i32 : i32, i32
  }
}

</mosaic_0001>

<bundles_post_ra>
// kernel: tpu_custom_call.1
= control target key start
LH: loop header
LB: loop body
LE: loop exit
PB: predicated region body
PF: predicated region fallthrough
CT: control target
= control target key end

     0   :  { %8 = vsyncpa [#allocation3], 0  ;;  %s375_s0 = inlined_call_operand.hbm [shape: f32[16,128], index: 0, kind: input, shape index: {}]   ;;  %s376_s1 = inlined_call_operand.hbm [shape: bf16[128,128], index: 1, kind: input, shape index: {}]   ;;  %s377_s2 = inlined_call_operand.vmem [shape: f32[1,128], index: 2, kind: input, shape index: {}]   ;;  %s378_s3 = inlined_call_operand.hbm [shape: f32[16,128], index: 3, kind: output, shape index: {}]  }
   0x1   :  { %9 = vsyncpa [#allocation6], 0 }
   0x2   :  { %10 = vsyncpa [#allocation4], 0  ;;  %s15_s14 = sshll.u32 %s375_s0, 4  ;;  %s330_s15 = smov [#allocation2]   ;;  %s16_s14 = int_to_ptr.hbm [resolvable:$true] %s15_s14 }
   0x3   :  { %s17_s16 = sshll.u32 %s330_s15, 4  ;;  %s28_s19 = sshll.u32 %s376_s1, 4  ;;  %s18_s16 = int_to_ptr.vmem [resolvable:$true] %s17_s16  ;;  %s29_s19 = int_to_ptr.hbm [resolvable:$true] %s28_s19 }
   0x4   :  { %s331_s20 = smov 128   ;;  %s332_s21 = smov 8  }
   0x5   :  { %23 = dma.hbm_to_vmem [thread:$0]  %s16_s14, 256, %s18_s16, [#allocation3], %s331_s20, %s331_s20, %s332_s21  }
   0x6   :  { %s333_s22 = smov [#allocation5]   ;;  %s334_s24 = smov 64  }
   0x7   :  { %s30_s23 = sshll.u32 %s333_s22, 4  ;;  %s335_s0 = smov 4   ;;  %s31_s23 = int_to_ptr.vmem [resolvable:$true] %s30_s23 }
   0x8   :  { %36 = dma.hbm_to_vmem [thread:$0]  %s29_s19, 1024, %s31_s23, [#allocation6], %s334_s24, %s334_s24, %s335_s0  }
   0x9   :  { %324 = dma.done.wait [#allocation3], 256  }
   0xa   :  { %325 = vsyncadd [#allocation3], 4294967040 }
   0xb   :  { %326 = dma.done.wait [#allocation6], 1024  }
   0xc   :  { %327 = vsyncadd [#allocation6], 4294966272  ;;  %v235_v0 = vld [vmem:[#allocation5 + $0x38] sm:$0xff]  ;;  %v234_v1 = vld [vmem:[#allocation5 + $0x30] sm:$0xff]  ;;  %s180_s29 = sshll.u32 %s378_s3, 4  ;;  %s181_s29 = int_to_ptr.hbm [resolvable:$true] %s180_s29 }
   0xd   :  { %118 = vmatpush.bf16.xpose.msra.mxu0 %v235_v0  ;;  %v233_v2 = vld [vmem:[#allocation5 + $0x28] sm:$0xff]  ;;  %v232_v3 = vld [vmem:[#allocation5 + $0x20] sm:$0xff]  ;;  %v231_v4 = vld [vmem:[#allocation5 + $0x18] sm:$0xff] }
   0xe   :  { %v230_v5 = vld [vmem:[#allocation5 + $0x10] sm:$0xff]  ;;  %v229_v6 = vld [vmem:[#allocation5 + $0x8] sm:$0xff]  ;;  %v228_v7 = vld [vmem:[#allocation5] sm:$0xff] }
   0xf   :  { %v47_v8 = vld [vmem:[#allocation2] sm:$0xff]  ;;  %v48_v9 = vld [vmem:[#allocation2 + $0x8] sm:$0xff] }
  0x10   :  { %v49_v10 = vpack.c.bf16 %v48_v9, %v47_v8  ;;  %v243_v11 = vld [vmem:[%s377_s2] ss:$0 sm:$0xff]  ;;  %s336_s2 = smov [#allocation7]  }
  0x11   :  { %s178_s26 = sshll.u32 %s336_s2, 4  ;;  %s179_s26 = int_to_ptr.vmem [resolvable:$true] %s178_s26 }
  0x15   :  { %119 = vmatpush.bf16.xpose.msra.mxu0 %v234_v1 }
  0x1d   :  { %120 = vmatpush.bf16.xpose.msra.mxu0 %v233_v2 }
  0x25   :  { %121 = vmatpush.bf16.xpose.msra.mxu0 %v232_v3 }
  0x2d   :  { %122 = vmatpush.bf16.xpose.msra.mxu0 %v231_v4 }
  0x35   :  { %123 = vmatpush.bf16.xpose.msra.mxu0 %v230_v5 }
  0x3d   :  { %124 = vmatpush.bf16.xpose.msra.mxu0 %v229_v6 }
  0x45   :  { %125 = vmatpush.bf16.xpose.msra.mxu0 %v228_v7 }
  0x4c   :  { %126 = vmatmul.bf16.vlgmr.msra.gmra.mxu0 %v49_v10 }
  0xc9   :  { %v127_v12 = vpop.f32.mrf.mxu0 }
  0xca   :  { %v128_v13 = vadd.f32 %v243_v11, %v127_v12 }
  0xcc   :  { %v226_v14 = vmul.f32 -1.442695, %v128_v13 }
  0xce   :  { %244 = vpow2.f32 %v226_v14 }
  0xd1   :  { %v129_v15 = vpop.f32.mrf.mxu0 }
  0xd2   :  { %v130_v16 = vadd.f32 %v243_v11, %v129_v15 }
  0xd4   :  { %v245_v17 = vpop.eup %244  ;;  %v227_v18 = vmul.f32 -1.442695, %v130_v16 }
  0xd5   :  { %v138_v19 = vadd.f32 1.0, %v245_v17 }
  0xd6   :  { %246 = vpow2.f32 %v227_v18 }
  0xd7   :  { %248 = vrcp.f32 %v138_v19  ;;  %v151_v25 = vand.u32 2147483648, %v138_v19  ;;  %v149_v27 = vand.u32 2147483647, %v138_v19  ;;  %vm145_vm1 = vweird.f32 %v138_v19 }
  0xd9   :  { %v152_v30 = vor.u32 1.1754944e-38, %v151_v25  ;;  %vm150_vm3 = vcmp.eq.f32.partialorder %v149_v27, 8.507059e+37 }
  0xdc   :  { %v247_v20 = vpop.eup %246 }
  0xdd   :  { %v249_v21 = vpop.eup %248  ;;  %v139_v22 = vadd.f32 1.0, %v247_v20 }
  0xde   :  { %v141_v23 = vmul.f32 %v249_v21, %v138_v19  ;;  %vm146_vm0 = vweird.f32 %v249_v21 }
  0xdf   :  { %250 = vrcp.f32 %v139_v22  ;;  %vm147_vm2 = vmor %vm145_vm1, %vm146_vm0  ;;  %v166_v36 = vand.u32 2147483648, %v139_v22  ;;  %v164_v38 = vand.u32 2147483647, %v139_v22  ;;  %vm160_vm5 = vweird.f32 %v139_v22 }
  0xe0   :  { %v142_v24 = vsub.f32 1.0, %v141_v23 }
  0xe1   :  { %v167_v40 = vor.u32 1.1754944e-38, %v166_v36  ;;  %vm165_vm7 = vcmp.eq.f32.partialorder %v164_v38, 8.507059e+37 }
  0xe2   :  { %v143_v26 = vmul.f32 %v249_v21, %v142_v24 }
  0xe4   :  { %v144_v28 = vadd.f32 %v249_v21, %v143_v26 }
  0xe5   :  { %v251_v29 = vpop.eup %250 }
  0xe6   :  { %v156_v31 = vmul.f32 %v251_v29, %v139_v22  ;;  %v148_v32 = vsel %vm147_vm2, %v249_v21, %v144_v28  ;;  %vm161_vm4 = vweird.f32 %v251_v29 }
  0xe7   :  { %v153_v33 = vsel %vm150_vm3, %v152_v30, %v148_v32  ;;  %vm162_vm6 = vmor %vm160_vm5, %vm161_vm4 }
  0xe8   :  { %v157_v34 = vsub.f32 1.0, %v156_v31  ;;  %v170_v35 = vmul.f32 %v153_v33, %v47_v8 }
  0xea   :  { %v158_v37 = vmul.f32 %v251_v29, %v157_v34  ;;  %172 = vst [vmem:[#allocation7] sm:$0xff] %v170_v35 }
  0xec   :  { %v159_v39 = vadd.f32 %v251_v29, %v158_v37 }
  0xee   :  { %v163_v41 = vsel %vm162_vm6, %v251_v29, %v159_v39 }
  0xef   :  { %v168_v42 = vsel %vm165_vm7, %v167_v40, %v163_v41 }
  0xf0   :  { %v171_v43 = vmul.f32 %v168_v42, %v48_v9 }
  0xf2   :  { %173 = vst [vmem:[#allocation7 + $0x8] sm:$0xff] %v171_v43 }
  0xf3   :  { %186 = dma.vmem_to_hbm [thread:$0]  %s179_s26, 256, %s181_s29, [#allocation4], %s331_s20, %s331_s20, %s332_s21  }
  0xf4   :  { %328 = dma.done.wait [#allocation4], 256  }
  0xf5   :  { %329 = vsyncadd [#allocation4], 4294967040 }
  0xf6   :  { %191 = vsyncpa [#allocation3], 1 }
  0xf7   :  { %192 = vsyncpa [#allocation6], 1 }
  0xf8   :  { %193 = vsyncpa [#allocation4], 1 }

</bundles_post_ra>
